<compile_context>
chip_gen: v7x
topology: tpu7x:2x2x1
jax: 0.10.0
libtpu: 0.0.40
codegen_flags: <defaults>
</compile_context>

<pallas_src>
import functools

import jax
import jax.numpy as jnp
from jax.experimental import pallas as pl
from jax.experimental.pallas import tpu as pltpu


def _round_up(x, m):
    return (x + m - 1) // m * m


def _label_smoothing_kernel(pred_ref, tgt_ref, out_ref, *, classes, smoothing, batch):
    """One batch tile (classes, TB) -> one (1, 1) partial sum of per-example losses."""
    i = pl.program_id(0)
    last = pl.num_programs(0) - 1
    tb = pred_ref.shape[1]

    confidence = 1.0 - smoothing
    off_value = smoothing / (classes - 1)

    # Stream native dtype (e.g. bf16) from HBM; upcast in VMEM for stable
    # log-softmax numerics.
    # TODO(synk): optional v6e/v7x-only bf16 elementwise path (f32 accum) left out;
    # f32 everywhere keeps v5e (no bf16 VPU/EUP) on the same code path.
    pred = pred_ref[...].astype(jnp.float32)                          # (C, TB)
    tgt = tgt_ref[...]                                                # (1, TB) int32

    # Class axis (axis 0) lives on sublanes: reductions are cross-vreg VALU
    # adds + one small sublane reduce, amortized over the 128 batch lanes.
    m = jnp.max(pred, axis=0, keepdims=True)                          # (1, TB)
    shifted = pred - m                                                # (C, TB)
    lse = jnp.log(jnp.sum(jnp.exp(shifted), axis=0, keepdims=True))   # (1, TB)

    # Single fused weighted class-sum:
    #   sum_c(-true_dist_c * logp_c) = lse - sum_c(w_c * shifted_c)
    # with w_c = confidence at the target class, off_value elsewhere.
    cls_idx = jax.lax.broadcasted_iota(jnp.int32, shifted.shape, 0)   # (C, TB)
    w = jnp.where(cls_idx == tgt, confidence, off_value)              # (C, TB)
    per_col = lse - jnp.sum(w * shifted, axis=0, keepdims=True)       # (1, TB)

    # Interior tiles: plain sum, no mask work.
    @pl.when(i != last)
    def _():
        out_ref[...] = jnp.sum(per_col, axis=1, keepdims=True)        # (1, 1)

    # Last tile: mask padded batch columns with a select.  Padded lanes hold
    # garbage VMEM (may be NaN/Inf); select does NOT propagate NaN, so the
    # partial sum stays clean.  Do not replace with arithmetic masking.
    @pl.when(i == last)
    def _():
        col = jax.lax.broadcasted_iota(jnp.int32, per_col.shape, 1)
        valid = (i * tb + col) < batch
        out_ref[...] = jnp.sum(jnp.where(valid, per_col, 0.0),
                               axis=1, keepdims=True)                 # (1, 1)


def label_smoothing_loss(pred, target, classes=18, smoothing=0.0, block_cols=16384):
    """pred: (B, C) float (any float dtype), target: (B,) int -> scalar f32 loss."""
    B, C = pred.shape
    assert C == classes and classes >= 2

    # Lane-dense layout: batch on the 128-lane axis, the few classes on sublanes.
    pred_t = pred.T                                    # (C, B), native dtype
    tgt2d = target.astype(jnp.int32).reshape(1, B)     # (1, B)

    # Batch tile along the lane axis: multiple of 128, capped at block_cols.
    # With classes on sublanes the double-buffered tile is only ~24*tb*dtype
    # bytes, comfortably inside the scoped-VMEM default on v5e/v6e/v7x even at
    # tb = 16384, so no vmem_limit_bytes override is needed.
    tb = _round_up(min(int(block_cols), _round_up(B, 128)), 128)
    # v7x megacore: a large batch that would otherwise be a single tile is
    # split into two balanced tiles so the "parallel" axis can use both TCs.
    if B > 4096 and pl.cdiv(B, tb) < 2:
        tb = _round_up(pl.cdiv(B, 2), 128)
    num_tiles = pl.cdiv(B, tb)

    kernel = functools.partial(
        _label_smoothing_kernel,
        classes=classes, smoothing=float(smoothing), batch=B,
    )

    partial_sums = pl.pallas_call(
        kernel,
        out_shape=jax.ShapeDtypeStruct((num_tiles, 1), jnp.float32),
        grid=(num_tiles,),
        in_specs=[
            pl.BlockSpec((C, tb), lambda i: (0, i)),    # pred tile (native dtype)
            pl.BlockSpec((1, tb), lambda i: (0, i)),    # target indices tile
        ],
        out_specs=pl.BlockSpec((1, 1), lambda i: (i, 0)),   # per-tile partial sum
        compiler_params=pltpu.CompilerParams(
            # Tiles are independent (each writes its own output block), so the
            # batch axis can shard across both TensorCores on v7x.
            dimension_semantics=("parallel",),
        ),
    )(pred_t, tgt2d)

    # Tiny finalize in the wrapper: sum of per-tile partials, then mean over B.
    return jnp.sum(partial_sums) * (1.0 / B)


def _reference(pred, target, classes=18, smoothing=0.0):
    confidence = 1.0 - smoothing
    logp = jax.nn.log_softmax(pred.astype(jnp.float32), axis=-1)
    true_dist = jnp.full_like(logp, smoothing / (classes - 1))
    onehot = jax.nn.one_hot(target, classes, dtype=logp.dtype)
    true_dist = jnp.where(onehot > 0, confidence, true_dist)
    return jnp.mean(jnp.sum(-true_dist * logp, axis=-1))


if __name__ == "__main__":
    classes = 18
    smoothing = 0.1

    key = jax.random.PRNGKey(0)
    kp, kt = jax.random.split(key)

    # Case 1: small batch, f32 input, single (last) tile with heavy lane padding.
    B = 8
    pred = jax.random.normal(kp, (B, classes), dtype=jnp.float32)
    target = jax.random.randint(kt, (B,), 0, classes, dtype=jnp.int32)
    loss = jax.block_until_ready(
        label_smoothing_loss(pred, target, classes=classes, smoothing=smoothing))
    ref = _reference(pred, target, classes=classes, smoothing=smoothing)
    assert jnp.allclose(loss, ref, rtol=1e-5, atol=1e-5), (loss, ref)

    # Case 2: multi-tile grid (2 full tiles + padded last tile), native bf16 input
    # (exercises the no-precast streaming path, the interior unmasked-sum path
    # and the masked last-tile path).
    B2 = 300
    pred2 = jax.random.normal(kp, (B2, classes), dtype=jnp.float32)
    target2 = jax.random.randint(kt, (B2,), 0, classes, dtype=jnp.int32)
    loss2 = jax.block_until_ready(
        label_smoothing_loss(pred2.astype(jnp.bfloat16), target2,
                             classes=classes, smoothing=smoothing, block_cols=128))
    ref2 = _reference(pred2.astype(jnp.bfloat16), target2,
                      classes=classes, smoothing=smoothing)
    assert jnp.allclose(loss2, ref2, rtol=2e-2, atol=2e-2), (loss2, ref2)

    # Case 3: batch large enough to trigger the balanced two-tile (megacore) split.
    B3 = 4224
    pred3 = jax.random.normal(kp, (B3, classes), dtype=jnp.float32)
    target3 = jax.random.randint(kt, (B3,), 0, classes, dtype=jnp.int32)
    loss3 = jax.block_until_ready(
        label_smoothing_loss(pred3, target3, classes=classes, smoothing=smoothing))
    ref3 = _reference(pred3, target3, classes=classes, smoothing=smoothing)
    assert jnp.allclose(loss3, ref3, rtol=1e-4, atol=1e-5), (loss3, ref3)

    print("KERNEL_OK")
</pallas_src>

<mosaic_0001>
module attributes {stable_mosaic.version = 11 : i64} {
  func.func @_label_smoothing_kernel(%arg0: i32, %arg1: memref<18x128xf32, #tpu.memory_space<vmem>>, %arg2: memref<1x128xi32, #tpu.memory_space<vmem>>, %arg3: memref<1x1xf32, #tpu.memory_space<vmem>>) attributes {dimension_semantics = [#tpu.dimension_semantics<parallel>], iteration_bounds = array<i64: 1>, scalar_prefetch = 0 : i64, scratch_operands = 0 : i64, tpu.core_type = #tpu.core_type<tc>, window_params = [{transform_indices = @transform_0, window_bounds = array<i64: 18, 128>}, {transform_indices = @transform_1, window_bounds = array<i64: 1, 128>}, {transform_indices = @transform_2, window_bounds = array<i64: 1, 1>}]} {
    %c0 = arith.constant 0 : index
    %c0_0 = arith.constant 0 : index
    %0 = vector.load %arg1[%c0, %c0_0] : memref<18x128xf32, #tpu.memory_space<vmem>>, vector<18x128xf32>
    %c0_1 = arith.constant 0 : index
    %c0_2 = arith.constant 0 : index
    %1 = vector.load %arg2[%c0_1, %c0_2] : memref<1x128xi32, #tpu.memory_space<vmem>>, vector<1x128xi32>
    %cst = arith.constant dense<0xFF800000> : vector<128xf32>
    %2 = vector.multi_reduction <maximumf>, %0, %cst [0] : vector<18x128xf32> to vector<128xf32>
    %3 = vector.shape_cast %2 : vector<128xf32> to vector<1x128xf32>
    %4 = vector.broadcast %3 : vector<1x128xf32> to vector<18x128xf32>
    %5 = arith.subf %0, %4 : vector<18x128xf32>
    %6 = math.exp %5 : vector<18x128xf32>
    %cst_3 = arith.constant dense<0.000000e+00> : vector<128xf32>
    %7 = vector.multi_reduction <add>, %6, %cst_3 [0] : vector<18x128xf32> to vector<128xf32>
    %8 = vector.shape_cast %7 : vector<128xf32> to vector<1x128xf32>
    %9 = math.log %8 : vector<1x128xf32>
    %10 = tpu.iota {dimensions = array<i32: 0>} : vector<18x128xi32>
    %11 = vector.broadcast %1 : vector<1x128xi32> to vector<18x128xi32>
    %12 = arith.cmpi eq, %10, %11 : vector<18x128xi32>
    %cst_4 = arith.constant 0.899999976 : f32
    %cst_5 = arith.constant 0.00588235306 : f32
    %13 = vector.broadcast %cst_4 : f32 to vector<18x128xf32>
    %14 = vector.broadcast %cst_5 : f32 to vector<18x128xf32>
    %15 = arith.select %12, %13, %14 : vector<18x128xi1>, vector<18x128xf32>
    %16 = arith.mulf %15, %5 : vector<18x128xf32>
    %cst_6 = arith.constant dense<0.000000e+00> : vector<128xf32>
    %17 = vector.multi_reduction <add>, %16, %cst_6 [0] : vector<18x128xf32> to vector<128xf32>
    %18 = vector.shape_cast %17 : vector<128xf32> to vector<1x128xf32>
    %19 = arith.subf %9, %18 : vector<1x128xf32>
    %c0_i32 = arith.constant 0 : i32
    %20 = arith.cmpi ne, %arg0, %c0_i32 : i32
    %21 = arith.extui %20 : i1 to i32
    %c0_i32_7 = arith.constant 0 : i32
    %22 = arith.cmpi ne, %21, %c0_i32_7 : i32
    scf.if %22 {
      %cst_10 = arith.constant dense<0.000000e+00> : vector<1xf32>
      %26 = vector.multi_reduction <add>, %19, %cst_10 [1] : vector<1x128xf32> to vector<1xf32>
      %27 = vector.shape_cast %26 : vector<1xf32> to vector<1x1xf32>
      %c0_11 = arith.constant 0 : index
      %c0_12 = arith.constant 0 : index
      %28 = vector.load %arg3[%c0_11, %c0_12] : memref<1x1xf32, #tpu.memory_space<vmem>>, vector<1x1xf32>
      tpu.vector_store %arg3[%c0_11, %c0_12], %27 {strides = array<i32>} : memref<1x1xf32, #tpu.memory_space<vmem>>, vector<1x1xf32>,
    } else {
    }
    %c0_i32_8 = arith.constant 0 : i32
    %23 = arith.cmpi eq, %arg0, %c0_i32_8 : i32
    %24 = arith.extui %23 : i1 to i32
    %c0_i32_9 = arith.constant 0 : i32
    %25 = arith.cmpi ne, %24, %c0_i32_9 : i32
    scf.if %25 {
      %26 = tpu.iota {dimensions = array<i32: 1>} : vector<1x128xi32>
      %c128_i32 = arith.constant 128 : i32
      %27 = arith.muli %arg0, %c128_i32 : i32
      %28 = vector.broadcast %27 : i32 to vector<1x128xi32>
      %29 = arith.addi %28, %26 : vector<1x128xi32>
      %c8_i32 = arith.constant 8 : i32
      %30 = vector.broadcast %c8_i32 : i32 to vector<1x128xi32>
      %31 = arith.cmpi slt, %29, %30 : vector<1x128xi32>
      %cst_10 = arith.constant 0.000000e+00 : f32
      %32 = vector.broadcast %cst_10 : f32 to vector<1x128xf32>
      %33 = arith.select %31, %19, %32 : vector<1x128xi1>, vector<1x128xf32>
      %cst_11 = arith.constant dense<0.000000e+00> : vector<1xf32>
      %34 = vector.multi_reduction <add>, %33, %cst_11 [1] : vector<1x128xf32> to vector<1xf32>
      %35 = vector.shape_cast %34 : vector<1xf32> to vector<1x1xf32>
      %c0_12 = arith.constant 0 : index
      %c0_13 = arith.constant 0 : index
      %36 = vector.load %arg3[%c0_12, %c0_13] : memref<1x1xf32, #tpu.memory_space<vmem>>, vector<1x1xf32>
      tpu.vector_store %arg3[%c0_12, %c0_13], %35 {strides = array<i32>} : memref<1x1xf32, #tpu.memory_space<vmem>>, vector<1x1xf32>,
    } else {
    }
    return
  }
  func.func @transform_0(%arg0: i32) -> (i32, i32) {
    %c0_i32 = arith.constant 0 : i32
    %c0_i32_0 = arith.constant 0 : i32
    return %c0_i32, %arg0 : i32, i32
  }
  func.func @transform_1(%arg0: i32) -> (i32, i32) {
    %c0_i32 = arith.constant 0 : i32
    %c0_i32_0 = arith.constant 0 : i32
    return %c0_i32, %arg0 : i32, i32
  }
  func.func @transform_2(%arg0: i32) -> (i32, i32) {
    %c0_i32 = arith.constant 0 : i32
    %c0_i32_0 = arith.constant 0 : i32
    return %arg0, %c0_i32 : i32, i32
  }
}

</mosaic_0001>

<bundles_post_ra>
// kernel: tpu_custom_call.1
= control target key start
LH: loop header
LB: loop body
LE: loop exit
PB: predicated region body
PF: predicated region fallthrough
CT: control target
= control target key end

     0   :  { %vm16_vm0 = vcmask 1041408   ;;  %s189_s0 = inlined_call_operand.vmem [shape: f32[18,8], index: 0, kind: input, shape index: {}]   ;;  %s190_s1 = inlined_call_operand.vmem [shape: s32[1,8], index: 1, kind: input, shape index: {}]   ;;  %s191_s2 = inlined_call_operand.hbm [shape: f32[1,1], index: 2, kind: output, shape index: {}]  }
   0x1   :  { %v12_v0 = vld [vmem:[%s189_s0] sm:$0xff]  ;;  %v13_v1 = vld [vmem:[%s189_s0 + $0x8] sm:$0xff]  ;;  %v14_v2 = vld [vmem:[%s189_s0 + $0x10] sm:$0x3] }
   0x2   :  { %v17_v3 = vsel %vm16_vm0, %v14_v2, -inf  ;;  %v18_v4 = vmax.f32 %v12_v0, %v13_v1 }
   0x3   :  { %7 = vsyncpa [#allocation3], 0  ;;  %v46_v8 = vlaneseq  ;;  %v110_v15 = vld [vmem:[%s190_s1] ss:$0 sm:$0xff]  ;;  %v145_v23 = vmov 0.005882353  }
   0x4   :  { %v19_v5 = vmax.f32 %v18_v4, %v17_v3  ;;  %s146_s0 = smov [#allocation2]   ;;  %vm94_vm5 = vcmask 0  }
   0x5   :  { %v47_v11 = vshrl.u32 %v46_v8, 7  ;;  %v86_v50 = vand.u32 127, %v46_v8  ;;  %s102_s1 = sshll.u32 %s146_s0, 4  ;;  %s103_s1 = int_to_ptr.vmem [resolvable:$true] %s102_s1 }
   0x6   :  { %v20_v6 = vrot.slane %v19_v5, 4  ;;  %s121_s17 = scalar_lea.vmem %s103_s1, 16  ;;  %s125_s18 = scalar_lea.vmem %s103_s1, 32 }
   0x7   :  { %v48_v14 = vadd.s32 8, %v47_v11  ;;  %v49_v19 = vadd.s32 16, %v47_v11  ;;  %vm54_vm1 = vcmp.eq.s32.totalorder %v47_v11, %v110_v15  ;;  %vm90_vm4 = vcmp.lt.s32.totalorder %v86_v50, 8  ;;  %p122_p0 = scmp.ne.s32.totalorder %s103_s1, %s121_s17  ;;  %p126_p1 = scmp.lt.s32.totalorder %s103_s1, %s103_s1 }
   0x8   :  { %v21_v7 = vmax.f32 %v19_v5, %v20_v6  ;;  %v57_v24 = vsel %vm54_vm1, 0.9, %v145_v23  ;;  %p127_p2 = scmp.lt.s32.totalorder %s125_s18, %s121_s17 }
   0x9   :  { %vm55_vm2 = vcmp.eq.s32.totalorder %v48_v14, %v110_v15  ;;  %vm56_vm3 = vcmp.eq.s32.totalorder %v49_v19, %v110_v15 }
   0xa   :  { %v22_v9 = vrot.slane %v21_v7, 2  ;;  %v58_v25 = vsel %vm55_vm2, 0.9, %v145_v23  ;;  %v59_v26 = vsel %vm56_vm3, 0.9, %v145_v23  ;;  %p128_p3 = por %p127_p2, %p126_p1 }
   0xc   :  { %v23_v10 = vmax.f32 %v21_v7, %v22_v9  ;;  %p129_p4 = pnand %p128_p3, %p122_p0 }
   0xe   :  { %v24_v12 = vrot.slane %v23_v10, 1 }
  0x10   :  { %v25_v13 = vmax.f32 %v23_v10, %v24_v12 }
  0x12   :  { %v26_v16 = vsub.f32 %v12_v0, %v25_v13  ;;  %v27_v17 = vsub.f32 %v13_v1, %v25_v13  ;;  %v28_v18 = vsub.f32 %v14_v2, %v25_v13 }
  0x14   :  { %v29_v20 = vmul.f32 1.442695, %v26_v16  ;;  %v31_v21 = vmul.f32 1.442695, %v27_v17  ;;  %v33_v22 = vmul.f32 1.442695, %v28_v18  ;;  %v60_v27 = vmul.f32 %v57_v24, %v26_v16 }
  0x15   :  { %v61_v28 = vmul.f32 %v58_v25, %v27_v17  ;;  %v62_v29 = vmul.f32 %v59_v26, %v28_v18 }
  0x16   :  { %113 = vpow2.f32 %v29_v20 }
  0x17   :  { %115 = vpow2.f32 %v31_v21  ;;  %v63_v30 = vadd.f32 %v61_v28, %v60_v27  ;;  %v64_v32 = vsel %vm16_vm0, %v62_v29, 0.0 }
  0x18   :  { %117 = vpow2.f32 %v33_v22 }
  0x19   :  { %v65_v37 = vadd.f32 %v64_v32, %v63_v30 }
  0x1b   :  { %v66_v40 = vrot.slane %v65_v37, 4 }
  0x1d   :  { %v67_v43 = vadd.f32 %v66_v40, %v65_v37 }
  0x1f   :  { %v68_v46 = vrot.slane %v67_v43, 2 }
  0x20   :  { %v114_v31 = vpop.eup %113 }
  0x21   :  { %v116_v33 = vpop.eup %115  ;;  %v69_v48 = vadd.f32 %v68_v46, %v67_v43 }
  0x22   :  { %v118_v34 = vpop.eup %117  ;;  %v35_v35 = vadd.f32 %v116_v33, %v114_v31 }
  0x23   :  { %v36_v36 = vsel %vm16_vm0, %v118_v34, 0.0  ;;  %v70_v49 = vrot.slane %v69_v48, 1 }
  0x24   :  { %v37_v38 = vadd.f32 %v36_v36, %v35_v35 }
  0x25   :  { %v71_v51 = vadd.f32 %v70_v49, %v69_v48 }
  0x26   :  { %v38_v39 = vrot.slane %v37_v38, 4 }
  0x28   :  { %v39_v41 = vadd.f32 %v38_v39, %v37_v38 }
  0x2a   :  { %v40_v42 = vrot.slane %v39_v41, 2 }
  0x2c   :  { %v41_v44 = vadd.f32 %v40_v42, %v39_v41 }
  0x2e   :  { %v42_v45 = vrot.slane %v41_v44, 1 }
  0x30   :  { %v43_v47 = vadd.f32 %v42_v45, %v41_v44 }
  0x32   :  { %119 = vlog2.f32 %v43_v47 }
  0x3c   :  { %v120_v52 = vpop.eup %119 }
  0x3d   :  { %v45_v53 = vmul.f32 0.6931472, %v120_v52 }
  0x3f   :  { %v72_v54 = vsub.f32 %v45_v53, %v71_v51 }
  0x41   :  { %v91_v55 = vsel %vm90_vm4, %v72_v54, 0.0 }
  0x42   :  { %92 = vadd.xlane.f32.xlu0 %v91_v55 }
  0xcf   :  { %v93_v56 = vpop.xlane.xlu0 %92 }
  0xd0   :  { %95 = vst.msk [vmem:[#allocation2] sm:$0x1] %vm94_vm5, %v93_v56 }
  0xd1   :  { %132 = shalt.err (!%p129_p4)
}
  0xd2   :  { %s133_s21 = scalar_lea.hbm %s191_s2, 16 }
  0xd3   :  { %p134_p5 = scmp.ne.s32.totalorder %s191_s2, %s133_s21  ;;  %p137_p6 = scmp.lt.u32.totalorder %s133_s21, %s191_s2 }
  0xd5   :  { %p139_p7 = pnand %p137_p6, %p134_p5 }
  0xd7   :  { %142 = shalt.err (!%p139_p7)
}
  0xd8   :  { %105 = dma.vmem_to_hbm [thread:$0]  %s103_s1, 16, %s191_s2, [#allocation3]  }
  0xd9   :  { %143 = dma.done.wait [#allocation3], 16  }
  0xda   :  { %144 = vsyncadd [#allocation3], 4294967280 }
  0xdb   :  { %109 = vsyncpa [#allocation3], 1 }

</bundles_post_ra>
